<compile_context>
chip_gen: v7x
topology: tpu7x:2x2x1
jax: 0.10.0
libtpu: 0.0.40
codegen_flags: <defaults>
</compile_context>

<pallas_src>
import jax
import jax.numpy as jnp
from jax.experimental import pallas as pl
from jax.experimental.pallas import tpu as pltpu


def _round_up(n, m):
    return ((n + m - 1) // m) * m


def _mlp_kernel(x_ref, w1_ref, b1_ref, w2_ref, b2_ref, w3_ref, b3_ref, o_ref):
    x = x_ref[...]                                            # (tile_b, 4)

    # fc1 + relu.  K=4: the MXU pass is >96% empty, but the kernel is
    # DMA-bound so the idle MXU is free and this avoids lane-broadcast
    # relayouts on the VPU/XLU path.
    h1 = jnp.dot(x, w1_ref[...], preferred_element_type=jnp.float32)
    h1 = jnp.maximum(h1 + b1_ref[...], 0.0)                   # (tile_b, 128)

    # fc2 + relu (lane-dense 128x128 MXU tile).
    h2 = jnp.dot(h1, w2_ref[...], preferred_element_type=jnp.float32)
    h2 = jnp.maximum(h2 + b2_ref[...], 0.0)                   # (tile_b, 128)

    # fc3: (tile_b,128) @ (128,401).  The store is 3 unmasked lane-groups plus
    # one masked group -- still far cheaper than writing a padded 512 column
    # slab and slicing it outside the kernel.
    out = jnp.dot(h2, w3_ref[...], preferred_element_type=jnp.float32)
    o_ref[...] = (out + b3_ref[...]).astype(o_ref.dtype)      # (tile_b, 401)


def _pick_tile_b(batch, tile_b):
    """Multiple-of-8 batch tile; >=2 grid steps whenever the batch allows it."""
    tile_b = max(8, (min(int(tile_b), 4096) // 8) * 8)
    if batch <= tile_b:
        if batch >= 32:
            # Split into (at least) two blocks: shards across v7x's two
            # TensorCores and keeps the x/out pipeline double-buffered.
            tile_b = _round_up((batch + 1) // 2, 8)
        else:
            tile_b = batch          # single block == full array (always legal)
    return tile_b


def complex_mlp_forward(x, packed, *, tile_b=2048):
    """x: (B, input_size) float32.  packed: dict from pack_params()."""
    B, in_size = x.shape
    h_pad = packed["w1"].shape[1]
    m_pad = packed["w2"].shape[1]
    out_size = packed["w3"].shape[1]          # true output width (401)

    tile_b = _pick_tile_b(B, tile_b)
    grid = (pl.cdiv(B, tile_b),)              # ragged last tile masked by Pallas

    flops = 2 * B * (in_size * h_pad + h_pad * m_pad + m_pad * out_size)
    bytes_accessed = 4 * (
        B * (in_size + out_size)
        + in_size * h_pad + h_pad * m_pad + m_pad * out_size
        + h_pad + m_pad + out_size)

    # Per-step VMEM footprint: double-buffered x/out blocks + resident weights
    # + fc1/fc2/fc3 temporaries (the fc3 value lives at 512 lanes in vregs).
    step_bytes = 4 * (
        2 * tile_b * (in_size + out_size)
        + in_size * h_pad + h_pad * m_pad + m_pad * out_size
        + h_pad + m_pad + out_size
        + tile_b * (h_pad + m_pad + _round_up(out_size, 128)))
    vmem_limit = int(min(48 * 1024 * 1024, max(32 * 1024 * 1024, 2 * step_bytes)))

    return pl.pallas_call(
        _mlp_kernel,
        out_shape=jax.ShapeDtypeStruct((B, out_size), jnp.float32),
        grid=grid,
        in_specs=[
            pl.BlockSpec((tile_b, in_size), lambda i: (i, 0)),    # x (batch-tiled)
            pl.BlockSpec((in_size, h_pad), lambda i: (0, 0)),     # w1 (VMEM-resident)
            pl.BlockSpec((1, h_pad), lambda i: (0, 0)),           # b1
            pl.BlockSpec((h_pad, m_pad), lambda i: (0, 0)),       # w2
            pl.BlockSpec((1, m_pad), lambda i: (0, 0)),           # b2
            pl.BlockSpec((m_pad, out_size), lambda i: (0, 0)),    # w3
            pl.BlockSpec((1, out_size), lambda i: (0, 0)),        # b3
        ],
        out_specs=pl.BlockSpec((tile_b, out_size), lambda i: (i, 0)),
        compiler_params=pltpu.CompilerParams(
            dimension_semantics=("parallel",),
            vmem_limit_bytes=vmem_limit),
        cost_estimate=pl.CostEstimate(
            flops=flops, transcendentals=0, bytes_accessed=bytes_accessed),
    )(x, packed["w1"], packed["b1"], packed["w2"], packed["b2"],
      packed["w3"], packed["b3"])


def init_raw_params(key, input_size=4, hidden_size=100, output_size=401,
                    zero_fc3=True):
    """PyTorch nn.Linear convention: weight (out, in), bias (out,)."""
    def linear_init(k, fan_in, fan_out):
        kw, kb = jax.random.split(k)
        bound = 1.0 / jnp.sqrt(jnp.float32(fan_in))
        w = jax.random.uniform(kw, (fan_out, fan_in), jnp.float32, -bound, bound)
        b = jax.random.uniform(kb, (fan_out,), jnp.float32, -bound, bound)
        return w, b

    k1, k2, k3 = jax.random.split(key, 3)
    w1, b1 = linear_init(k1, input_size, hidden_size)
    w2, b2 = linear_init(k2, hidden_size, 20)
    if zero_fc3:
        # Matches the module: init.zeros_(fc3.weight), init.zeros_(fc3.bias)
        w3 = jnp.zeros((output_size, 20), jnp.float32)
        b3 = jnp.zeros((output_size,), jnp.float32)
    else:
        # Non-zero fc3 so the third matmul is actually exercised by the test.
        w3, b3 = linear_init(k3, 20, output_size)

    scale = jnp.array([1.0, 190000000000000.0, 80000000000.0, 10.0], jnp.float32)
    return {"w1": w1, "b1": b1, "w2": w2, "b2": b2, "w3": w3, "b3": b3,
            "scale": scale}


def pack_params(raw):
    """Transpose to (in, out), fold 1/scale into w1, zero-pad only the
    contraction dims (hidden 100->128, mid 20->128).  Output width (401) is
    NOT padded -- the kernel stores exactly 401 lanes."""
    in_size = raw["w1"].shape[1]
    hidden = raw["w1"].shape[0]
    mid = raw["w2"].shape[0]
    out = raw["w3"].shape[0]
    h_pad = _round_up(hidden, 128)
    m_pad = _round_up(mid, 128)

    def pad2(a, rows, cols):
        return jnp.pad(a, ((0, rows - a.shape[0]), (0, cols - a.shape[1])))

    # Fold the per-input-column division by scale into w1's rows:
    # (x / s) @ W1^T == x @ (W1^T with row k divided by s[k]).
    w1 = raw["w1"].T / raw["scale"][:, None]             # (4, hidden)
    return {
        "w1": pad2(w1, in_size, h_pad),                   # (4, 128)
        "b1": pad2(raw["b1"][None, :], 1, h_pad),         # (1, 128)
        "w2": pad2(raw["w2"].T, h_pad, m_pad),            # (128, 128)
        "b2": pad2(raw["b2"][None, :], 1, m_pad),         # (1, 128)
        "w3": pad2(raw["w3"].T, m_pad, out),              # (128, 401)
        "b3": raw["b3"][None, :],                         # (1, 401)
    }


def reference_forward(x, raw):
    """Pure-JAX reference with the literal PyTorch semantics."""
    hp = jax.lax.Precision.HIGHEST
    h = x / raw["scale"][None, :]
    h = jnp.maximum(jnp.dot(h, raw["w1"].T, precision=hp) + raw["b1"], 0.0)
    h = jnp.maximum(jnp.dot(h, raw["w2"].T, precision=hp) + raw["b2"], 0.0)
    return jnp.dot(h, raw["w3"].T, precision=hp) + raw["b3"]


if __name__ == "__main__":
    key = jax.random.PRNGKey(0)
    kp, kp2, kx, kx2 = jax.random.split(key, 4)

    input_size, hidden_size, output_size = 4, 100, 401

    def make_x(k, batch):
        # Input with per-feature magnitudes roughly matching the scale vector.
        v = jax.random.normal(k, (batch, input_size), jnp.float32)
        return v * jnp.array([[1.0, 1.9e14, 8.0e10, 10.0]], jnp.float32)

    tol = dict(atol=1e-3, rtol=1e-3)  # kernel dots use Mosaic default precision

    # 1) Module-faithful init (fc3 zero-initialized), default tiling:
    #    B=30 < 32 -> single full-array block, grid of 1.
    x0 = make_x(kx, 30)
    raw0 = init_raw_params(kp, input_size, hidden_size, output_size, zero_fc3=True)
    out0 = jax.block_until_ready(complex_mlp_forward(x0, pack_params(raw0)))
    ref0 = reference_forward(x0, raw0)
    assert out0.shape == (30, output_size), out0.shape
    assert jnp.allclose(out0, ref0, **tol), "mismatch (zero fc3, single block)"

    # 2) Non-zero fc3, default tiling: B=40 >= 32 -> two grid steps with a
    #    ragged second tile (24 + 16 rows).
    x1 = make_x(kx2, 40)
    raw1 = init_raw_params(kp2, input_size, hidden_size, output_size, zero_fc3=False)
    p1 = pack_params(raw1)
    out1 = jax.block_until_ready(complex_mlp_forward(x1, p1))
    ref1 = reference_forward(x1, raw1)
    assert out1.shape == (40, output_size), out1.shape
    assert jnp.allclose(out1, ref1, **tol), "mismatch (nonzero fc3, 2-step grid)"

    # 3) Non-zero fc3, small explicit tile: B=30, tile_b=8 -> 4 grid steps with
    #    a ragged (6-row) last tile, exercising the masked edge store.
    out2 = jax.block_until_ready(complex_mlp_forward(x0, p1, tile_b=8))
    ref2 = reference_forward(x0, raw1)
    assert out2.shape == (30, output_size), out2.shape
    assert jnp.allclose(out2, ref2, **tol), "mismatch (nonzero fc3, ragged grid)"

    print("KERNEL_OK")
</pallas_src>

<mosaic_0001>
module attributes {stable_mosaic.version = 11 : i64} {
  func.func @_mlp_kernel(%arg0: i32, %arg1: memref<30x4xf32, #tpu.memory_space<vmem>>, %arg2: memref<4x128xf32, #tpu.memory_space<vmem>>, %arg3: memref<1x128xf32, #tpu.memory_space<vmem>>, %arg4: memref<128x128xf32, #tpu.memory_space<vmem>>, %arg5: memref<1x128xf32, #tpu.memory_space<vmem>>, %arg6: memref<128x401xf32, #tpu.memory_space<vmem>>, %arg7: memref<1x401xf32, #tpu.memory_space<vmem>>, %arg8: memref<30x401xf32, #tpu.memory_space<vmem>>) attributes {dimension_semantics = [#tpu.dimension_semantics<parallel>], iteration_bounds = array<i64: 1>, scalar_prefetch = 0 : i64, scratch_operands = 0 : i64, tpu.core_type = #tpu.core_type<tc>, window_params = [{transform_indices = @transform_0, window_bounds = array<i64: 30, 4>}, {pipeline_mode = #tpu.pipeline_mode<synchronous>, transform_indices = @transform_1, window_bounds = array<i64: 4, 128>}, {pipeline_mode = #tpu.pipeline_mode<synchronous>, transform_indices = @transform_2, window_bounds = array<i64: 1, 128>}, {pipeline_mode = #tpu.pipeline_mode<synchronous>, transform_indices = @transform_3, window_bounds = array<i64: 128, 128>}, {pipeline_mode = #tpu.pipeline_mode<synchronous>, transform_indices = @transform_4, window_bounds = array<i64: 1, 128>}, {pipeline_mode = #tpu.pipeline_mode<synchronous>, transform_indices = @transform_5, window_bounds = array<i64: 128, 401>}, {pipeline_mode = #tpu.pipeline_mode<synchronous>, transform_indices = @transform_6, window_bounds = array<i64: 1, 401>}, {transform_indices = @transform_7, window_bounds = array<i64: 30, 401>}]} {
    %c0 = arith.constant 0 : index
    %c0_0 = arith.constant 0 : index
    %0 = vector.load %arg1[%c0, %c0_0] : memref<30x4xf32, #tpu.memory_space<vmem>>, vector<30x4xf32>
    %c0_1 = arith.constant 0 : index
    %c0_2 = arith.constant 0 : index
    %1 = vector.load %arg2[%c0_1, %c0_2] : memref<4x128xf32, #tpu.memory_space<vmem>>, vector<4x128xf32>
    %cst = arith.constant dense<0.000000e+00> : vector<30x128xf32>
    %2 = tpu.matmul %0, %1, %cst {dimension_numbers = #tpu.dot_dimension_numbers<[1], [0], [0], [1], [0, 0, 1, 1], [], []>} : vector<30x4xf32>, vector<4x128xf32>, vector<30x128xf32> -> vector<30x128xf32>
    %c0_3 = arith.constant 0 : index
    %c0_4 = arith.constant 0 : index
    %3 = vector.load %arg3[%c0_3, %c0_4] : memref<1x128xf32, #tpu.memory_space<vmem>>, vector<1x128xf32>
    %4 = vector.broadcast %3 : vector<1x128xf32> to vector<30x128xf32>
    %5 = arith.addf %2, %4 : vector<30x128xf32>
    %cst_5 = arith.constant 0.000000e+00 : f32
    %6 = vector.broadcast %cst_5 : f32 to vector<30x128xf32>
    %7 = arith.maximumf %5, %6 : vector<30x128xf32>
    %c0_6 = arith.constant 0 : index
    %c0_7 = arith.constant 0 : index
    %8 = vector.load %arg4[%c0_6, %c0_7] : memref<128x128xf32, #tpu.memory_space<vmem>>, vector<128x128xf32>
    %cst_8 = arith.constant dense<0.000000e+00> : vector<30x128xf32>
    %9 = tpu.matmul %7, %8, %cst_8 {dimension_numbers = #tpu.dot_dimension_numbers<[1], [0], [0], [1], [0, 0, 1, 1], [], []>} : vector<30x128xf32>, vector<128x128xf32>, vector<30x128xf32> -> vector<30x128xf32>
    %c0_9 = arith.constant 0 : index
    %c0_10 = arith.constant 0 : index
    %10 = vector.load %arg5[%c0_9, %c0_10] : memref<1x128xf32, #tpu.memory_space<vmem>>, vector<1x128xf32>
    %11 = vector.broadcast %10 : vector<1x128xf32> to vector<30x128xf32>
    %12 = arith.addf %9, %11 : vector<30x128xf32>
    %cst_11 = arith.constant 0.000000e+00 : f32
    %13 = vector.broadcast %cst_11 : f32 to vector<30x128xf32>
    %14 = arith.maximumf %12, %13 : vector<30x128xf32>
    %c0_12 = arith.constant 0 : index
    %c0_13 = arith.constant 0 : index
    %15 = vector.load %arg6[%c0_12, %c0_13] : memref<128x401xf32, #tpu.memory_space<vmem>>, vector<128x401xf32>
    %cst_14 = arith.constant dense<0.000000e+00> : vector<30x401xf32>
    %16 = tpu.matmul %14, %15, %cst_14 {dimension_numbers = #tpu.dot_dimension_numbers<[1], [0], [0], [1], [0, 0, 1, 1], [], []>} : vector<30x128xf32>, vector<128x401xf32>, vector<30x401xf32> -> vector<30x401xf32>
    %c0_15 = arith.constant 0 : index
    %c0_16 = arith.constant 0 : index
    %17 = vector.load %arg7[%c0_15, %c0_16] : memref<1x401xf32, #tpu.memory_space<vmem>>, vector<1x401xf32>
    %18 = vector.broadcast %17 : vector<1x401xf32> to vector<30x401xf32>
    %19 = arith.addf %16, %18 : vector<30x401xf32>
    %c0_17 = arith.constant 0 : index
    %c0_18 = arith.constant 0 : index
    %20 = vector.load %arg8[%c0_17, %c0_18] : memref<30x401xf32, #tpu.memory_space<vmem>>, vector<30x401xf32>
    tpu.vector_store %arg8[%c0_17, %c0_18], %19 {strides = array<i32>} : memref<30x401xf32, #tpu.memory_space<vmem>>, vector<30x401xf32>,
    return
  }
  func.func @transform_0(%arg0: i32) -> (i32, i32) {
    %c0_i32 = arith.constant 0 : i32
    %c0_i32_0 = arith.constant 0 : i32
    return %arg0, %c0_i32 : i32, i32
  }
  func.func @transform_1(%arg0: i32) -> (i32, i32) {
    %c0_i32 = arith.constant 0 : i32
    %c0_i32_0 = arith.constant 0 : i32
    %c0_i32_1 = arith.constant 0 : i32
    return %c0_i32, %c0_i32_0 : i32, i32
  }
  func.func @transform_2(%arg0: i32) -> (i32, i32) {
    %c0_i32 = arith.constant 0 : i32
    %c0_i32_0 = arith.constant 0 : i32
    %c0_i32_1 = arith.constant 0 : i32
    return %c0_i32, %c0_i32_0 : i32, i32
  }
  func.func @transform_3(%arg0: i32) -> (i32, i32) {
    %c0_i32 = arith.constant 0 : i32
    %c0_i32_0 = arith.constant 0 : i32
    %c0_i32_1 = arith.constant 0 : i32
    return %c0_i32, %c0_i32_0 : i32, i32
  }
  func.func @transform_4(%arg0: i32) -> (i32, i32) {
    %c0_i32 = arith.constant 0 : i32
    %c0_i32_0 = arith.constant 0 : i32
    %c0_i32_1 = arith.constant 0 : i32
    return %c0_i32, %c0_i32_0 : i32, i32
  }
  func.func @transform_5(%arg0: i32) -> (i32, i32) {
    %c0_i32 = arith.constant 0 : i32
    %c0_i32_0 = arith.constant 0 : i32
    %c0_i32_1 = arith.constant 0 : i32
    return %c0_i32, %c0_i32_0 : i32, i32
  }
  func.func @transform_6(%arg0: i32) -> (i32, i32) {
    %c0_i32 = arith.constant 0 : i32
    %c0_i32_0 = arith.constant 0 : i32
    %c0_i32_1 = arith.constant 0 : i32
    return %c0_i32, %c0_i32_0 : i32, i32
  }
  func.func @transform_7(%arg0: i32) -> (i32, i32) {
    %c0_i32 = arith.constant 0 : i32
    %c0_i32_0 = arith.constant 0 : i32
    return %arg0, %c0_i32 : i32, i32
  }
}

</mosaic_0001>

<bundles_post_ra>
// kernel: tpu_custom_call.1
= control target key start
LH: loop header
LB: loop body
LE: loop exit
PB: predicated region body
PF: predicated region fallthrough
CT: control target
= control target key end

     0   :  { %vm52_vm0 = vcmask 1043456   ;;  %vm39_vm1 = vcmask 31744   ;;  %s1152_s0 = inlined_call_operand.vmem [shape: f32[30,4], index: 0, kind: input, shape index: {}]   ;;  %s1153_s1 = inlined_call_operand.vmem [shape: f32[4,128], index: 1, kind: input, shape index: {}]   ;;  %s1154_s2 = inlined_call_operand.vmem [shape: f32[1,128], index: 2, kind: input, shape index: {}]   ;;  %s1155_s3 = inlined_call_operand.vmem [shape: f32[128,128], index: 3, kind: input, shape index: {}]   ;;  %s1156_s4 = inlined_call_operand.vmem [shape: f32[1,128], index: 4, kind: input, shape index: {}]   ;;  %s1157_s5 = inlined_call_operand.vmem [shape: f32[128,401], index: 5, kind: input, shape index: {}]   ;;  %s1158_s6 = inlined_call_operand.vmem [shape: f32[1,401], index: 6, kind: input, shape index: {}]   ;;  %s1159_s7 = inlined_call_operand.hbm [shape: f32[30,401], index: 7, kind: output, shape index: {}]  }
   0x1   :  { %v31_v0 = vld [vmem:[%s1153_s1] sm:$0xf]  ;;  %v28_v2 = vld [vmem:[%s1152_s0 + $0x8] sm:$0xff]  ;;  %v29_v3 = vld [vmem:[%s1152_s0 + $0x10] sm:$0xff] }
   0x2   :  { %v27_v1 = vld [vmem:[%s1152_s0] sm:$0xff]  ;;  %587 = vmatprep.subr.msk.mxu0 %vm52_vm0, %v31_v0  ;;  %v146_v5 = vld [vmem:[%s1155_s3 + $0x8] sm:$0xff]  ;;  %v147_v6 = vld [vmem:[%s1155_s3 + $0x10] sm:$0xff] }
   0x3   :  { %589 = vmatprep.mubr.msk.f32.mxu0 %vm39_vm1, %v27_v1  ;;  %v145_v4 = vld [vmem:[%s1155_s3] sm:$0xff]  ;;  %588 = vmatpush3.msk.msra.mxu0 %vm52_vm0, %v31_v0  ;;  %v148_v7 = vld [vmem:[%s1155_s3 + $0x18] sm:$0xff]  ;;  %v150_v12 = vld [vmem:[%s1155_s3 + $0x28] sm:$0xff] }
   0x4   :  { %590 = vmatmul.mubr.msk.f32.vlgmr.msra.gmra.mrb[0].mxu0 %vm39_vm1, %v28_v2  ;;  %v633_v8 = vpack.c.bf16 %v146_v5, %v145_v4  ;;  %v637_v9 = vpack.c.bf16 %v148_v7, %v147_v6  ;;  %v30_v10 = vld [vmem:[%s1152_s0 + $0x18] sm:$0x3f]  ;;  %v149_v11 = vld [vmem:[%s1155_s3 + $0x20] sm:$0xff] }
   0x5   :  { %592 = vmatprep.mubr.msk.f32.mxu0 %vm39_vm1, %v29_v3 }
   0x6   :  { %634 = vmatprep.subr.bf16.mxu1 %v633_v8 }
   0x7   :  { %636 = vmatpush3.bf16.msra.mxu1 %v633_v8 }
   0x8   :  { %12 = vsyncpa [#allocation3], 0  ;;  %593 = vmatmul.mubr.msk.f32.gmra.mrb[2].mxu0 %vm39_vm1, %v30_v10  ;;  %638 = vmatprep.subr.bf16.mxu1 %v637_v9  ;;  %v641_v13 = vpack.c.bf16 %v150_v12, %v149_v11  ;;  %v151_v14 = vld [vmem:[%s1155_s3 + $0x30] sm:$0xff]  ;;  %v152_v15 = vld [vmem:[%s1155_s3 + $0x38] sm:$0xff]  ;;  %vm524_vm2 = vcmask 138240   ;;  %vm537_vm3 = vcmask 136192  }
   0x9   :  { %v645_v16 = vpack.c.bf16 %v152_v15, %v151_v14  ;;  %v153_v17 = vld [vmem:[%s1155_s3 + $0x40] sm:$0xff]  ;;  %v154_v18 = vld [vmem:[%s1155_s3 + $0x48] sm:$0xff]  ;;  %v155_v20 = vld [vmem:[%s1155_s3 + $0x50] sm:$0xff] }
   0xa   :  { %v649_v19 = vpack.c.bf16 %v154_v18, %v153_v17  ;;  %v156_v21 = vld [vmem:[%s1155_s3 + $0x58] sm:$0xff]  ;;  %v157_v23 = vld [vmem:[%s1155_s3 + $0x60] sm:$0xff]  ;;  %v158_v24 = vld [vmem:[%s1155_s3 + $0x68] sm:$0xff] }
   0xb   :  { %640 = vmatpush3.bf16.msra.mxu1 %v637_v9  ;;  %v653_v22 = vpack.c.bf16 %v156_v21, %v155_v20  ;;  %v657_v25 = vpack.c.bf16 %v158_v24, %v157_v23  ;;  %v159_v26 = vld [vmem:[%s1155_s3 + $0x70] sm:$0xff]  ;;  %v160_v27 = vld [vmem:[%s1155_s3 + $0x78] sm:$0xff]  ;;  %v258_v29 = vld [vmem:[%s1157_s5 + $0x8] sm:$0xff] }
   0xc   :  { %642 = vmatprep.subr.bf16.mxu1 %v641_v13  ;;  %v661_v28 = vpack.c.bf16 %v160_v27, %v159_v26  ;;  %v262_v30 = vld [vmem:[%s1157_s5 + $0x28] sm:$0xff]  ;;  %v260_v31 = vld [vmem:[%s1157_s5 + $0x18] sm:$0xff]  ;;  %v257_v34 = vld [vmem:[%s1157_s5] sm:$0xff] }
   0xd   :  { %v665_v32 = vpack.c.bf16 %v262_v30, %v258_v29  ;;  %v264_v33 = vld [vmem:[%s1157_s5 + $0x38] sm:$0xff]  ;;  %v261_v35 = vld [vmem:[%s1157_s5 + $0x20] sm:$0xff]  ;;  %v266_v38 = vld [vmem:[%s1157_s5 + $0x48] sm:$0xff] }
   0xe   :  { %v902_v36 = vpack.c.bf16 %v264_v33, %v260_v31  ;;  %v667_v37 = vpack.c.bf16 %v261_v35, %v257_v34  ;;  %v270_v39 = vld [vmem:[%s1157_s5 + $0x68] sm:$0xff]  ;;  %v265_v41 = vld [vmem:[%s1157_s5 + $0x40] sm:$0xff]  ;;  %v259_v14 = vld [vmem:[%s1157_s5 + $0x10] sm:$0xff] }
   0xf   :  { %644 = vmatpush3.bf16.msra.mxu1 %v641_v13  ;;  %666 = vmatprep.subr.bf16.mxu0 %v665_v32  ;;  %v669_v40 = vpack.c.bf16 %v270_v39, %v266_v38  ;;  %v269_v42 = vld [vmem:[%s1157_s5 + $0x60] sm:$0xff]  ;;  %v274_v44 = vld [vmem:[%s1157_s5 + $0x88] sm:$0xff]  ;;  %v263_v15 = vld [vmem:[%s1157_s5 + $0x30] sm:$0xff] }
  0x10   :  { %646 = vmatprep.subr.bf16.mxu1 %v645_v16  ;;  %668 = vmatpush1.bf16.msra.mxu0 %v667_v37  ;;  %v671_v43 = vpack.c.bf16 %v269_v42, %v265_v41  ;;  %v278_v45 = vld [vmem:[%s1157_s5 + $0xa8] sm:$0xff]  ;;  %v273_v47 = vld [vmem:[%s1157_s5 + $0x80] sm:$0xff]  ;;  %v268_v17 = vld [vmem:[%s1157_s5 + $0x58] sm:$0xff]  ;;  %v992_v21 = vpack.c.bf16 %v263_v15, %v259_v14 }
  0x11   :  { %670 = vmatprep.subr.bf16.mxu0 %v669_v40  ;;  %v673_v46 = vpack.c.bf16 %v278_v45, %v274_v44  ;;  %v277_v48 = vld [vmem:[%s1157_s5 + $0xa0] sm:$0xff]  ;;  %v282_v50 = vld [vmem:[%s1157_s5 + $0xc8] sm:$0xff]  ;;  %v272_v18 = vld [vmem:[%s1157_s5 + $0x78] sm:$0xff] }
  0x12   :  { %v675_v49 = vpack.c.bf16 %v277_v48, %v273_v47  ;;  %v286_v51 = vld [vmem:[%s1157_s5 + $0xe8] sm:$0xff]  ;;  %v281_v53 = vld [vmem:[%s1157_s5 + $0xc0] sm:$0xff]  ;;  %v267_v26 = vld [vmem:[%s1157_s5 + $0x50] sm:$0xff] }
  0x13   :  { %648 = vmatpush3.bf16.msra.mxu1 %v645_v16  ;;  %v677_v52 = vpack.c.bf16 %v286_v51, %v282_v50  ;;  %v285_v54 = vld [vmem:[%s1157_s5 + $0xe0] sm:$0xff]  ;;  %v290_v55 = vld [vmem:[%s1157_s5 + $0x108] sm:$0xff]  ;;  %v271_v27 = vld [vmem:[%s1157_s5 + $0x70] sm:$0xff] }
  0x14   :  { %650 = vmatprep.subr.bf16.mxu1 %v649_v19  ;;  %672 = vmatpush1.bf16.msra.mxu0 %v671_v43  ;;  %v294_v56 = vld [vmem:[%s1157_s5 + $0x128] sm:$0xff]  ;;  %v679_v57 = vpack.c.bf16 %v285_v54, %v281_v53  ;;  %v289_v59 = vld [vmem:[%s1157_s5 + $0x100] sm:$0xff]  ;;  %v276_v29 = vld [vmem:[%s1157_s5 + $0x98] sm:$0xff]  ;;  %v1009_v33 = vpack.c.bf16 %v271_v27, %v267_v26 }
  0x15   :  { %674 = vmatprep.subr.bf16.mxu0 %v673_v46  ;;  %v681_v58 = vpack.c.bf16 %v294_v56, %v290_v55  ;;  %v293_v60 = vld [vmem:[%s1157_s5 + $0x120] sm:$0xff]  ;;  %v298_v61 = vld [vmem:[%s1157_s5 + $0x148] sm:$0xff]  ;;  %v280_v30 = vld [vmem:[%s1157_s5 + $0xb8] sm:$0xff] }
  0x16   :  { %v302_v62 = vld [vmem:[%s1157_s5 + $0x168] sm:$0xff]  ;;  %v683_v63 = vpack.c.bf16 %v293_v60, %v289_v59  ;;  %v297_v1 = vld [vmem:[%s1157_s5 + $0x140] sm:$0xff]  ;;  %v1012_v34 = vpack.c.bf16 %v280_v30, %v276_v29  ;;  %v275_v35 = vld [vmem:[%s1157_s5 + $0x90] sm:$0xff] }
  0x17   :  { %652 = vmatpush3.bf16.msra.mxu1 %v649_v19  ;;  %v685_v0 = vpack.c.bf16 %v302_v62, %v298_v61  ;;  %v301_v2 = vld [vmem:[%s1157_s5 + $0x160] sm:$0xff]  ;;  %v306_v3 = vld [vmem:[%s1157_s5 + $0x188] sm:$0xff]  ;;  %v279_v37 = vld [vmem:[%s1157_s5 + $0xb0] sm:$0xff] }
  0x18   :  { %654 = vmatprep.subr.bf16.mxu1 %v653_v22  ;;  %676 = vmatpush1.bf16.msra.mxu0 %v675_v49  ;;  %v310_v4 = vld [vmem:[%s1157_s5 + $0x1a8] sm:$0xff]  ;;  %v687_v5 = vpack.c.bf16 %v301_v2, %v297_v1  ;;  %v305_v7 = vld [vmem:[%s1157_s5 + $0x180] sm:$0xff]  ;;  %v284_v38 = vld [vmem:[%s1157_s5 + $0xd8] sm:$0xff]  ;;  %v1027_v40 = vpack.c.bf16 %v279_v37, %v275_v35 }
  0x19   :  { %678 = vmatprep.subr.bf16.mxu0 %v677_v52  ;;  %v689_v6 = vpack.c.bf16 %v310_v4, %v306_v3  ;;  %v309_v8 = vld [vmem:[%s1157_s5 + $0x1a0] sm:$0xff]  ;;  %v288_v39 = vld [vmem:[%s1157_s5 + $0xf8] sm:$0xff]  ;;  %v283_v42 = vld [vmem:[%s1157_s5 + $0xd0] sm:$0xff] }
  0x1a   :  { %v691_v9 = vpack.c.bf16 %v309_v8, %v305_v7  ;;  %v555_v10 = vld [vmem:[%s1154_s2] ss:$0 sm:$0xff]  ;;  %v1030_v41 = vpack.c.bf16 %v288_v39, %v284_v38  ;;  %v287_v43 = vld [vmem:[%s1157_s5 + $0xf0] sm:$0xff]  ;;  %v292_v44 = vld [vmem:[%s1157_s5 + $0x118] sm:$0xff] }
  0x1b   :  { %656 = vmatpush3.bf16.msra.mxu1 %v653_v22  ;;  %v296_v45 = vld [vmem:[%s1157_s5 + $0x138] sm:$0xff]  ;;  %v1045_v46 = vpack.c.bf16 %v287_v43, %v283_v42  ;;  %v291_v48 = vld [vmem:[%s1157_s5 + $0x110] sm:$0xff]  ;;  %v313_v4 = vld [vmem:[%s1157_s5 + $0x1c0] sm:$0xff] }
  0x1c   :  { %658 = vmatprep.subr.bf16.mxu1 %v657_v25  ;;  %680 = vmatpush1.bf16.msra.mxu0 %v679_v57  ;;  %v1048_v47 = vpack.c.bf16 %v296_v45, %v292_v44  ;;  %v295_v49 = vld [vmem:[%s1157_s5 + $0x130] sm:$0xff]  ;;  %v300_v50 = vld [vmem:[%s1157_s5 + $0x158] sm:$0xff]  ;;  %v321_v27 = vld [vmem:[%s1158_s6] sm:$0xf]  ;;  %s774_s6 = smov [#allocation2]  }
  0x1d   :  { %682 = vmatprep.subr.bf16.mxu0 %v681_v58  ;;  %v304_v51 = vld [vmem:[%s1157_s5 + $0x178] sm:$0xff]  ;;  %v1063_v52 = vpack.c.bf16 %v295_v49, %v291_v48  ;;  %v299_v54 = vld [vmem:[%s1157_s5 + $0x150] sm:$0xff]  ;;  %s544_s16 = sshll.u32 %s774_s6, 4  ;;  %s545_s16 = int_to_ptr.vmem [resolvable:$true] %s544_s16 }
  0x1e   :  { %v1066_v53 = vpack.c.bf16 %v304_v51, %v300_v50  ;;  %v303_v55 = vld [vmem:[%s1157_s5 + $0x170] sm:$0xff]  ;;  %v308_v56 = vld [vmem:[%s1157_s5 + $0x198] sm:$0xff]  ;;  %s749_s17 = scalar_lea.vmem %s545_s16, 2048  ;;  %p754_p1 = scmp.lt.s32.totalorder %s545_s16, %s545_s16 }
  0x1f   :  { %660 = vmatpush3.bf16.msra.mxu1 %v657_v25  ;;  %v994_v25 = vpack.c.bf16 %v272_v18, %v268_v17  ;;  %v312_v57 = vld [vmem:[%s1157_s5 + $0x1b8] sm:$0xff]  ;;  %v1081_v58 = vpack.c.bf16 %v303_v55, %v299_v54  ;;  %v307_v60 = vld [vmem:[%s1157_s5 + $0x190] sm:$0xff]  ;;  %p750_p0 = scmp.ne.s32.totalorder %s545_s16, %s749_s17  ;;  %p755_p2 = scmp.lt.s32.totalorder %s749_s17, %s749_s17 }
  0x20   :  { %662 = vmatprep.subr.bf16.mxu1 %v661_v28  ;;  %684 = vmatpush1.bf16.msra.mxu0 %v683_v63  ;;  %v1084_v59 = vpack.c.bf16 %v312_v57, %v308_v56  ;;  %v311_v61 = vld [vmem:[%s1157_s5 + $0x1b0] sm:$0xff]  ;;  %v314_v63 = vld [vmem:[%s1157_s5 + $0x1c8] sm:$0xff]  ;;  %v316_v1 = vld [vmem:[%s1157_s5 + $0x1d8] sm:$0xff] }
  0x21   :  { %686 = vmatprep.subr.bf16.mxu0 %v685_v0  ;;  %v723_v62 = vpack.c.bf16 %v311_v61, %v307_v60  ;;  %v318_v0 = vld [vmem:[%s1157_s5 + $0x1e8] sm:$0xff]  ;;  %v320_v3 = vld [vmem:[%s1157_s5 + $0x1f8] sm:$0xff]  ;;  %v315_v8 = vld [vmem:[%s1157_s5 + $0x1d0] sm:$0xff]  ;;  %p756_p3 = por %p755_p2, %p754_p1 }
  0x22   :  { %v693_v2 = vpack.c.bf16 %v318_v0, %v314_v63 }
  0x23   :  { %664 = vmatpush3.bf16.msra.mxu1 %v661_v28  ;;  %p757_p4 = pnand %p756_p3, %p750_p0 }
  0x24   :  { %729 = vmatprep.subr.bf16.mxu1 %v902_v36  ;;  %688 = vmatpush1.bf16.msra.mxu0 %v687_v5  ;;  %v317_v5 = vld [vmem:[%s1157_s5 + $0x1e0] sm:$0xff] }
  0x25   :  { %690 = vmatprep.subr.bf16.mxu0 %v689_v6  ;;  %v725_v6 = vpack.c.bf16 %v320_v3, %v316_v1  ;;  %v695_v7 = vpack.c.bf16 %v317_v5, %v313_v4 }
  0x28   :  { %692 = vmatpush1.bf16.msra.mxu0 %v691_v9  ;;  %v319_v9 = vld [vmem:[%s1157_s5 + $0x1f0] sm:$0xff] }
  0x29   :  { %694 = vmatprep.subr.bf16.mxu0 %v693_v2 }
  0x2c   :  { %696 = vmatpush1.bf16.msra.mxu0 %v695_v7 }
  0x2d   :  { %698 = vmatprep.subr.bf16.mxu0 %v902_v36 }
  0xd7   :  { %v591_v11 = vpop.f32.mrb[0].mxu0 }
  0xd8   :  { %v128_v12 = vadd.f32 %v591_v11, %v555_v10  ;;  %v122_v13 = vpop.f32.mrb[1].mxu0  ;;  %v773_v11 = vmov 0.0  }
  0xd9   :  { %v123_v16 = vadd.f32 %v555_v10, %v122_v13  ;;  %407 = vmatprep.mubr.f32.mxu0 %v773_v11 }
  0xda   :  { %v142_v22 = vmax.f32 %v128_v12, 0.0  ;;  %v561_v12 = vld [vmem:[%s1156_s4] ss:$0 sm:$0xff] }
  0xdb   :  { %v141_v19 = vmax.f32 %v123_v16, 0.0  ;;  %v594_v20 = vpop.f32.mrb[2].mxu0 }
  0xdc   :  { %v138_v23 = vadd.f32 %v594_v20, %v555_v10  ;;  %v132_v24 = vpop.f32.mrb[3].mxu0 }
  0xdd   :  { %627 = vmatprep.mubr.f32.mxu1 %v141_v19  ;;  %v133_v28 = vadd.f32 %v555_v10, %v132_v24  ;;  %v727_v10 = vpack.c.bf16 %v319_v9, %v315_v8 }
  0xde   :  { %628 = vmatmul.mubr.f32.vlgmr.msra.gmra.mrb[0].mxu1 %v142_v22  ;;  %v144_v31 = vmax.f32 %v138_v23, 0.0 }
  0xdf   :  { %v143_v32 = vmax.f32 %v133_v28, 0.0  ;;  %737 = vmatpush1.bf16.msra.mxu1 %v992_v21 }
  0xe0   :  { %730 = vmatprep.subr.bf16.mxu1 %v994_v25 }
  0xe1   :  { %630 = vmatprep.mubr.f32.mxu1 %v143_v32 }
  0xe2   :  { %631 = vmatmul.mubr.f32.gmra.mrb[2].mxu1 %v144_v31 }
  0xe3   :  { %738 = vmatpush1.bf16.msra.mxu1 %v1009_v33  ;;  %502 = vmatprep.mubr.f32.mxu1 %v773_v11 }
  0xe4   :  { %731 = vmatprep.subr.bf16.mxu1 %v1012_v34 }
  0xe7   :  { %739 = vmatpush1.bf16.msra.mxu1 %v1027_v40 }
  0xe8   :  { %732 = vmatprep.subr.bf16.mxu1 %v1030_v41 }
  0xeb   :  { %740 = vmatpush1.bf16.msra.mxu1 %v1045_v46 }
  0xec   :  { %733 = vmatprep.subr.bf16.mxu1 %v1048_v47 }
  0xef   :  { %741 = vmatpush1.bf16.msra.mxu1 %v1063_v52 }
  0xf0   :  { %734 = vmatprep.subr.bf16.mxu1 %v1066_v53 }
  0xf3   :  { %742 = vmatpush1.bf16.msra.mxu1 %v1081_v58 }
  0xf4   :  { %735 = vmatprep.subr.bf16.mxu1 %v1084_v59 }
  0xf7   :  { %743 = vmatpush1.bf16.msra.mxu1 %v723_v62 }
  0xf8   :  { %736 = vmatprep.subr.bf16.mxu1 %v725_v6 }
  0xfb   :  { %744 = vmatpush1.bf16.msra.mxu1 %v727_v10 }
 0x1b1   :  { %v629_v13 = vpop.f32.mrb[0].mxu1 }
 0x1b2   :  { %v240_v14 = vadd.f32 %v629_v13, %v561_v12  ;;  %v234_v15 = vpop.f32.mrb[1].mxu1 }
 0x1b3   :  { %v235_v16 = vadd.f32 %v561_v12, %v234_v15 }
 0x1b4   :  { %v254_v17 = vmax.f32 %v240_v14, 0.0 }
 0x1b5   :  { %v253_v18 = vmax.f32 %v235_v16, 0.0  ;;  %v632_v19 = vpop.f32.mrb[2].mxu1 }
 0x1b6   :  { %503 = vmatmul.mubr.f32.vlgmr.msra.gmra.mrb[4].mxu1 %v254_v17  ;;  %v244_v20 = vpop.f32.mrb[3].mxu1  ;;  %v250_v22 = vadd.f32 %v632_v19, %v561_v12 }
 0x1b7   :  { %408 = vmatmul.mubr.f32.vlgmr.msra.gmra.mrb[4].mxu0 %v253_v18  ;;  %v245_v23 = vadd.f32 %v561_v12, %v244_v20  ;;  %508 = vmatprep.mubr.f32.mxu1 %v773_v11 }
 0x1b8   :  { %700 = vmatpush1.bf16.msra.mxu0 %v992_v21  ;;  %413 = vmatprep.mubr.f32.mxu0 %v773_v11  ;;  %v256_v24 = vmax.f32 %v250_v22, 0.0  ;;  %v323_v21 = vlaneseq }
 0x1b9   :  { %702 = vmatprep.subr.bf16.mxu0 %v994_v25  ;;  %v255_v36 = vmax.f32 %v245_v23, 0.0 }
 0x1ba   :  { %v324_v25 = vshrl.u32 %v323_v21, 7 }
 0x1bb   :  { %414 = vmatmul.mubr.f32.gmra.mrb[6].mxu0 %v254_v17  ;;  %509 = vmatmul.mubr.f32.gmra.mrb[6].mxu1 %v255_v36 }
 0x1bc   :  { %704 = vmatpush1.bf16.msra.mxu0 %v1009_v33  ;;  %419 = vmatprep.mubr.f32.mxu0 %v773_v11  ;;  %v333_v26 = vsub.s32 2, %v324_v25  ;;  %v325_v28 = vsub.s32 0, %v324_v25  ;;  %v337_v29 = vsub.s32 3, %v324_v25  ;;  %v329_v30 = vsub.s32 1, %v324_v25 }
 0x1bd   :  { %706 = vmatprep.subr.bf16.mxu0 %v1012_v34  ;;  %514 = vmatprep.mubr.f32.mxu1 %v773_v11 }
 0x1be   :  { %v334_v31 = vrot.slane %v321_v27, %v333_v26  ;;  %v326_v32 = vrot.slane %v321_v27, %v325_v28  ;;  %v338_v33 = vrot.slane %v321_v27, %v337_v29  ;;  %v330_v34 = vrot.slane %v321_v27, %v329_v30 }
 0x1bf   :  { %420 = vmatmul.mubr.f32.gmra.mrb[8].mxu0 %v255_v36  ;;  %515 = vmatmul.mubr.f32.gmra.mrb[8].mxu1 %v256_v24 }
 0x1c0   :  { %708 = vmatpush1.bf16.msra.mxu0 %v1027_v40  ;;  %425 = vmatprep.mubr.f32.mxu0 %v773_v11 }
 0x1c1   :  { %710 = vmatprep.subr.bf16.mxu0 %v1030_v41 }
 0x1c3   :  { %426 = vmatmul.mubr.f32.gmra.mrb[10].mxu0 %v256_v24 }
 0x1c4   :  { %712 = vmatpush1.bf16.msra.mxu0 %v1045_v46  ;;  %496 = vmatprep.mubr.f32.mxu0 %v773_v11 }
 0x1c5   :  { %714 = vmatprep.subr.bf16.mxu0 %v1048_v47 }
 0x1c8   :  { %716 = vmatpush1.bf16.msra.mxu0 %v1063_v52 }
 0x1c9   :  { %718 = vmatprep.subr.bf16.mxu0 %v1066_v53 }
 0x1cc   :  { %720 = vmatpush1.bf16.msra.mxu0 %v1081_v58 }
 0x1cd   :  { %722 = vmatprep.subr.bf16.mxu0 %v1084_v59 }
 0x1d0   :  { %724 = vmatpush1.bf16.msra.mxu0 %v723_v62 }
 0x1d1   :  { %726 = vmatprep.subr.bf16.mxu0 %v725_v6 }
 0x1d4   :  { %728 = vmatpush1.bf16.msra.mxu0 %v727_v10 }
 0x1d7   :  { %497 = vmatmul.mubr.f32.vlgmr.msra.gmra.mrb[12].mxu0 %v253_v18 }
 0x289   :  { %v504_v35 = vpop.f32.mrb[4].mxu1 }
 0x28a   :  { %v505_v37 = vadd.f32 %v504_v35, %v334_v31  ;;  %v409_v38 = vpop.f32.mrb[4].mxu0  ;;  %v506_v39 = vpop.f32.mrb[5].mxu1 }
 0x28b   :  { %v410_v40 = vadd.f32 %v409_v38, %v326_v32  ;;  %v507_v41 = vadd.f32 %v506_v39, %v338_v33  ;;  %v411_v42 = vpop.f32.mrb[5].mxu0 }
 0x28c   :  { %528 = vst [vmem:[#allocation2 + $0x30] sm:$0xff] %v505_v37  ;;  %v412_v43 = vadd.f32 %v411_v42, %v330_v34 }
 0x28d   :  { %521 = vst [vmem:[#allocation2] sm:$0xff] %v410_v40  ;;  %529 = vst.msk [vmem:[#allocation2 + $0x38] sm:$0xff] %vm524_vm2, %v507_v41 }
 0x28e   :  { %522 = vst [vmem:[#allocation2 + $0x8] sm:$0xff] %v412_v43  ;;  %v415_v44 = vpop.f32.mrb[6].mxu0  ;;  %v510_v45 = vpop.f32.mrb[6].mxu1 }
 0x28f   :  { %v416_v46 = vadd.f32 %v415_v44, %v326_v32  ;;  %v417_v47 = vpop.f32.mrb[7].mxu0  ;;  %v511_v48 = vadd.f32 %v510_v45, %v334_v31  ;;  %v512_v49 = vpop.f32.mrb[7].mxu1 }
 0x290   :  { %v418_v50 = vadd.f32 %v417_v47, %v330_v34  ;;  %v513_v51 = vadd.f32 %v512_v49, %v338_v33 }
 0x291   :  { %526 = vst [vmem:[#allocation2 + $0x20] sm:$0xff] %v416_v46  ;;  %532 = vst [vmem:[#allocation2 + $0x50] sm:$0xff] %v511_v48 }
 0x292   :  { %527 = vst [vmem:[#allocation2 + $0x28] sm:$0xff] %v418_v50  ;;  %v421_v52 = vpop.f32.mrb[8].mxu0  ;;  %533 = vst.msk [vmem:[#allocation2 + $0x58] sm:$0xff] %vm524_vm2, %v513_v51  ;;  %v516_v53 = vpop.f32.mrb[8].mxu1 }
 0x293   :  { %v422_v54 = vadd.f32 %v421_v52, %v326_v32  ;;  %v423_v55 = vpop.f32.mrb[9].mxu0  ;;  %v517_v56 = vadd.f32 %v516_v53, %v334_v31  ;;  %v518_v57 = vpop.f32.mrb[9].mxu1 }
 0x294   :  { %v424_v58 = vadd.f32 %v423_v55, %v330_v34  ;;  %v519_v59 = vadd.f32 %v518_v57, %v338_v33 }
 0x295   :  { %530 = vst [vmem:[#allocation2 + $0x40] sm:$0xff] %v422_v54  ;;  %536 = vst [vmem:[#allocation2 + $0x70] sm:$0x3f] %v517_v56 }
 0x296   :  { %531 = vst [vmem:[#allocation2 + $0x48] sm:$0xff] %v424_v58  ;;  %v427_v60 = vpop.f32.mrb[10].mxu0  ;;  %538 = vst.msk [vmem:[#allocation2 + $0x78] sm:$0x3f] %vm537_vm3, %v519_v59 }
 0x297   :  { %v428_v61 = vadd.f32 %v427_v60, %v326_v32  ;;  %v429_v62 = vpop.f32.mrb[11].mxu0 }
 0x298   :  { %v430_v63 = vadd.f32 %v429_v62, %v330_v34 }
 0x299   :  { %534 = vst [vmem:[#allocation2 + $0x60] sm:$0x3f] %v428_v61 }
 0x29a   :  { %535 = vst [vmem:[#allocation2 + $0x68] sm:$0x3f] %v430_v63 }
 0x2aa   :  { %v498_v0 = vpop.f32.mrb[12].mxu0 }
 0x2ab   :  { %v499_v1 = vadd.f32 %v498_v0, %v334_v31  ;;  %v500_v2 = vpop.f32.mrb[13].mxu0 }
 0x2ac   :  { %v501_v3 = vadd.f32 %v500_v2, %v338_v33 }
 0x2ad   :  { %523 = vst [vmem:[#allocation2 + $0x10] sm:$0xff] %v499_v1 }
 0x2ae   :  { %525 = vst.msk [vmem:[#allocation2 + $0x18] sm:$0xff] %vm524_vm2, %v501_v3 }
 0x2af   :  { %760 = shalt.err (!%p757_p4)
}
 0x2b0   :  { %s761_s20 = scalar_lea.hbm %s1159_s7, 2048 }
 0x2b1   :  { %p762_p5 = scmp.ne.s32.totalorder %s1159_s7, %s761_s20  ;;  %p765_p6 = scmp.lt.u32.totalorder %s761_s20, %s1159_s7 }
 0x2b3   :  { %p767_p7 = pnand %p765_p6, %p762_p5 }
 0x2b5   :  { %770 = shalt.err (!%p767_p7)
}
 0x2b6   :  { %s775_s3 = smov 512   ;;  %s776_s24 = smov 32  }
 0x2b7   :  { %550 = dma.vmem_to_hbm [thread:$0]  %s545_s16, 2048, %s1159_s7, [#allocation3], %s775_s3, %s775_s3, %s776_s24  }
 0x2b8   :  { %771 = dma.done.wait [#allocation3], 2048  }
 0x2b9   :  { %772 = vsyncadd [#allocation3], 4294965248 }
 0x2ba   :  { %554 = vsyncpa [#allocation3], 1 }

</bundles_post_ra>
